<compile_context>
chip_gen: v5e
topology: v5e:2x2
jax: 0.10.0
libtpu: 0.0.40
codegen_flags: <defaults>
</compile_context>

<pallas_src>
import jax
import jax.numpy as jnp
from jax.experimental import pallas as pl
from jax.experimental.pallas import tpu as pltpu


def _round_up(a, b):
    return ((a + b - 1) // b) * b


# ----------------------------------------------------------------------------- kernel
def cdm_kernel(x_ref, yt_ref, w1x_ref, rv_ref, w2_ref, b2_ref, o_ref):
    yt = yt_ref[...]                                   # (tile, 2) f32: [y | t]
    rv = rv_ref[...]                                   # (3, H)   f32 packed row vectors

    # linear1 over the *virtual* concat [x | y | t_emb], time-embedding folded in.
    h = jnp.dot(x_ref[...], w1x_ref[...],
                preferred_element_type=jnp.float32)    # (tile, H)  MXU, bf16 in / f32 acc
    h = h + yt[:, 0:1] * rv[0:1, :]                    # y column of W1        (VPU f32)
    h = h + yt[:, 1:2] * rv[1:2, :]                    # t * (wt @ W1t)        (VPU f32)
    h = h + rv[2:3, :]                                 # b1 + bt @ W1t

    # linear2 (module has no nonlinearity between the layers)
    out = jnp.dot(h.astype(w2_ref.dtype), w2_ref[...],
                  preferred_element_type=jnp.float32)  # (tile, Din)
    o_ref[...] = (out + b2_ref[...]).astype(o_ref.dtype)


# ----------------------------------------------------------------------------- wrapper
def conditional_diffusion_forward(kparams, x, y, t, *, tile_n=512):
    """x: (B,S,Din) float, y: (B,S), t: (B,)  ->  (B,S,Din) float32."""
    B, S, Din = x.shape
    H = kparams["w1x"].shape[1]
    N = B * S

    # effective tile: cap by (rounded) N, keep a multiple of 16 rows (bf16 sublanes)
    tile = min(tile_n, _round_up(N, 16))
    tile = _round_up(tile, 16)
    N_pad = _round_up(N, tile)
    grid = (N_pad // tile,)

    x_tok = x.reshape(N, Din).astype(jnp.bfloat16)
    y_tok = y.reshape(N, 1).astype(jnp.float32)
    t_tok = jnp.broadcast_to(t.astype(jnp.float32)[:, None], (B, S)).reshape(N, 1)
    yt_tok = jnp.concatenate([y_tok, t_tok], axis=-1)            # (N, 2) f32

    if N_pad != N:
        pad = N_pad - N
        x_tok = jnp.pad(x_tok, ((0, pad), (0, 0)))
        yt_tok = jnp.pad(yt_tok, ((0, pad), (0, 0)))

    tok_spec = lambda feat: pl.BlockSpec((tile, feat), lambda i: (i, 0))
    full_spec = lambda r, c: pl.BlockSpec((r, c), lambda i: (0, 0))

    out = pl.pallas_call(
        cdm_kernel,
        out_shape=jax.ShapeDtypeStruct((N_pad, Din), jnp.float32),
        grid_spec=pltpu.PrefetchScalarGridSpec(
            num_scalar_prefetch=0,
            grid=grid,
            in_specs=[
                tok_spec(Din),          # x tokens             (bf16)
                tok_spec(2),            # [y | t] tokens       (f32)
                full_spec(Din, H),      # W1x                  (bf16)
                full_spec(3, H),        # [w1y; wt@W1t; b1+bt@W1t]  (f32)
                full_spec(H, Din),      # W2                   (bf16)
                full_spec(1, Din),      # b2                   (f32)
            ],
            out_specs=pl.BlockSpec((tile, Din), lambda i: (i, 0)),
        ),
        compiler_params=pltpu.CompilerParams(
            dimension_semantics=("parallel",)),
    )(x_tok, yt_tok,
      kparams["w1x"], kparams["rowvecs"], kparams["w2"], kparams["b2"])

    return out[:N].reshape(B, S, Din)


# ----------------------------------------------------------------------------- params
def init_params(key, input_dim, condition_dim, time_embedding_dim, hidden=128):
    """Raw PyTorch-style params (uniform +-1/sqrt(fan_in)), all float32."""
    ks = jax.random.split(key, 6)
    cat_dim = input_dim + condition_dim + time_embedding_dim

    def unif(k, shape, fan_in):
        b = 1.0 / jnp.sqrt(jnp.float32(fan_in))
        return jax.random.uniform(k, shape, jnp.float32, -b, b)

    return {
        "wt": unif(ks[0], (1, time_embedding_dim), 1),
        "bt": unif(ks[1], (1, time_embedding_dim), 1),
        "w1": unif(ks[2], (cat_dim, hidden), cat_dim),
        "b1": unif(ks[3], (1, hidden), cat_dim),
        "w2": unif(ks[4], (hidden, input_dim), hidden),
        "b2": unif(ks[5], (1, input_dim), hidden),
    }


def prepare_kernel_params(p, input_dim, condition_dim, time_embedding_dim):
    """Fold time-embedding Linear into linear1, pack row vectors, cast matmul weights."""
    assert condition_dim == 1, "y.unsqueeze(-1) contributes exactly one feature"
    w1 = p["w1"]
    w1x = w1[:input_dim]                                         # (Din, H)
    w1y = w1[input_dim:input_dim + condition_dim]                # (1, H)
    w1t = w1[input_dim + condition_dim:]                         # (Temb, H)

    w1t_eff = p["wt"] @ w1t                                      # (1, H)  exact fold
    b1_eff = p["b1"] + p["bt"] @ w1t                             # (1, H)
    rowvecs = jnp.concatenate([w1y, w1t_eff, b1_eff], axis=0).astype(jnp.float32)

    return {
        "w1x": w1x.astype(jnp.bfloat16),
        "rowvecs": rowvecs,                                      # (3, H) f32
        "w2": p["w2"].astype(jnp.bfloat16),
        "b2": p["b2"].astype(jnp.float32),
    }


# ----------------------------------------------------------------------------- refs
def reference_forward_f32(p, x, y, t):
    """Pure-f32 reference exactly matching the PyTorch module."""
    B, S, Din = x.shape
    te = t.astype(jnp.float32)[:, None] * p["wt"] + p["bt"]      # (B, Temb)
    te = jnp.broadcast_to(te[:, None, :], (B, S, te.shape[-1]))
    feat = jnp.concatenate([x, y[..., None], te], axis=-1)
    h = feat @ p["w1"] + p["b1"]
    return h @ p["w2"] + p["b2"]


def reference_forward_matched(kparams, x, y, t):
    """Same math / precision path as the kernel, in plain jnp (tight check)."""
    B, S, Din = x.shape
    N = B * S
    x_tok = x.reshape(N, Din).astype(jnp.bfloat16)
    y_tok = y.reshape(N, 1).astype(jnp.float32)
    t_tok = jnp.broadcast_to(t.astype(jnp.float32)[:, None], (B, S)).reshape(N, 1)
    rv = kparams["rowvecs"]
    h = jnp.dot(x_tok, kparams["w1x"], preferred_element_type=jnp.float32)
    h = h + y_tok * rv[0:1, :] + t_tok * rv[1:2, :] + rv[2:3, :]
    out = jnp.dot(h.astype(jnp.bfloat16), kparams["w2"],
                  preferred_element_type=jnp.float32) + kparams["b2"]
    return out.reshape(B, S, Din)


# ----------------------------------------------------------------------------- demo
if __name__ == "__main__":
    input_dim = 16
    condition_dim = 1          # y contributes exactly one feature after unsqueeze(-1)
    time_embedding_dim = 32
    timesteps = 100            # stored attribute; not used in the forward math

    key = jax.random.PRNGKey(0)
    kx, ky, kt, kw = jax.random.split(key, 4)
    raw = init_params(kw, input_dim, condition_dim, time_embedding_dim)
    kparams = prepare_kernel_params(raw, input_dim, condition_dim, time_embedding_dim)

    # --- small shape consistent with the module -------------------------------
    B, S = 2, 8
    x = jax.random.normal(kx, (B, S, input_dim), jnp.float32)
    y = jax.random.normal(ky, (B, S), jnp.float32)
    t = jax.random.randint(kt, (B,), 0, timesteps).astype(jnp.float32)

    out = conditional_diffusion_forward(kparams, x, y, t)
    out = jax.block_until_ready(out)
    assert out.shape == (B, S, input_dim)

    ref_m = reference_forward_matched(kparams, x, y, t)
    assert jnp.allclose(out, ref_m, atol=1e-3, rtol=1e-3), "mismatch vs matched-precision ref"
    ref32 = reference_forward_f32(raw, x, y, t)
    assert jnp.allclose(out, ref32, atol=2e-1, rtol=2e-2), "mismatch vs f32 reference"

    # --- larger ragged shape: exercises big tiles, multi-step grid, padding ----
    B2, S2 = 4, 300            # N = 1200 -> tile 512, grid 3, padded to 1536
    kx2, ky2, kt2 = jax.random.split(jax.random.PRNGKey(1), 3)
    x2 = jax.random.normal(kx2, (B2, S2, input_dim), jnp.float32)
    y2 = jax.random.normal(ky2, (B2, S2), jnp.float32)
    t2 = jax.random.randint(kt2, (B2,), 0, timesteps).astype(jnp.float32)

    out2 = jax.block_until_ready(conditional_diffusion_forward(kparams, x2, y2, t2))
    assert out2.shape == (B2, S2, input_dim)
    ref_m2 = reference_forward_matched(kparams, x2, y2, t2)
    assert jnp.allclose(out2, ref_m2, atol=1e-3, rtol=1e-3), "mismatch (large) vs matched ref"
    ref32_2 = reference_forward_f32(raw, x2, y2, t2)
    assert jnp.allclose(out2, ref32_2, atol=2e-1, rtol=2e-2), "mismatch (large) vs f32 ref"

    print("KERNEL_OK")
</pallas_src>

<mosaic_0001>
module attributes {stable_mosaic.version = 11 : i64} {
  func.func @cdm_kernel(%arg0: i32, %arg1: memref<16x16xbf16, #tpu.memory_space<vmem>>, %arg2: memref<16x2xf32, #tpu.memory_space<vmem>>, %arg3: memref<16x128xbf16, #tpu.memory_space<vmem>>, %arg4: memref<3x128xf32, #tpu.memory_space<vmem>>, %arg5: memref<128x16xbf16, #tpu.memory_space<vmem>>, %arg6: memref<1x16xf32, #tpu.memory_space<vmem>>, %arg7: memref<16x16xf32, #tpu.memory_space<vmem>>) attributes {dimension_semantics = [#tpu.dimension_semantics<parallel>], iteration_bounds = array<i64: 1>, scalar_prefetch = 0 : i64, scratch_operands = 0 : i64, tpu.core_type = #tpu.core_type<tc>, window_params = [{transform_indices = @transform_0, window_bounds = array<i64: 16, 16>}, {transform_indices = @transform_1, window_bounds = array<i64: 16, 2>}, {pipeline_mode = #tpu.pipeline_mode<synchronous>, transform_indices = @transform_2, window_bounds = array<i64: 16, 128>}, {pipeline_mode = #tpu.pipeline_mode<synchronous>, transform_indices = @transform_3, window_bounds = array<i64: 3, 128>}, {pipeline_mode = #tpu.pipeline_mode<synchronous>, transform_indices = @transform_4, window_bounds = array<i64: 128, 16>}, {pipeline_mode = #tpu.pipeline_mode<synchronous>, transform_indices = @transform_5, window_bounds = array<i64: 1, 16>}, {transform_indices = @transform_6, window_bounds = array<i64: 16, 16>}]} {
    %c0 = arith.constant 0 : index
    %c0_0 = arith.constant 0 : index
    %0 = vector.load %arg2[%c0, %c0_0] : memref<16x2xf32, #tpu.memory_space<vmem>>, vector<16x2xf32>
    %c0_1 = arith.constant 0 : index
    %c0_2 = arith.constant 0 : index
    %1 = vector.load %arg4[%c0_1, %c0_2] : memref<3x128xf32, #tpu.memory_space<vmem>>, vector<3x128xf32>
    %c0_3 = arith.constant 0 : index
    %c0_4 = arith.constant 0 : index
    %2 = vector.load %arg1[%c0_3, %c0_4] : memref<16x16xbf16, #tpu.memory_space<vmem>>, vector<16x16xbf16>
    %c0_5 = arith.constant 0 : index
    %c0_6 = arith.constant 0 : index
    %3 = vector.load %arg3[%c0_5, %c0_6] : memref<16x128xbf16, #tpu.memory_space<vmem>>, vector<16x128xbf16>
    %cst = arith.constant dense<0.000000e+00> : vector<16x128xf32>
    %4 = tpu.matmul %2, %3, %cst {dimension_numbers = #tpu.dot_dimension_numbers<[1], [0], [0], [1], [0, 0, 1, 1], [], []>} : vector<16x16xbf16>, vector<16x128xbf16>, vector<16x128xf32> -> vector<16x128xf32>
    %5 = vector.extract_strided_slice %0 {offsets = [0, 0], sizes = [16, 1], strides = [1, 1]} : vector<16x2xf32> to vector<16x1xf32>
    %6 = vector.extract_strided_slice %1 {offsets = [0, 0], sizes = [1, 128], strides = [1, 1]} : vector<3x128xf32> to vector<1x128xf32>
    %7 = vector.broadcast %5 : vector<16x1xf32> to vector<16x128xf32>
    %8 = vector.broadcast %6 : vector<1x128xf32> to vector<16x128xf32>
    %9 = arith.mulf %7, %8 : vector<16x128xf32>
    %10 = arith.addf %4, %9 : vector<16x128xf32>
    %11 = vector.extract_strided_slice %0 {offsets = [0, 1], sizes = [16, 1], strides = [1, 1]} : vector<16x2xf32> to vector<16x1xf32>
    %12 = vector.extract_strided_slice %1 {offsets = [1, 0], sizes = [1, 128], strides = [1, 1]} : vector<3x128xf32> to vector<1x128xf32>
    %13 = vector.broadcast %11 : vector<16x1xf32> to vector<16x128xf32>
    %14 = vector.broadcast %12 : vector<1x128xf32> to vector<16x128xf32>
    %15 = arith.mulf %13, %14 : vector<16x128xf32>
    %16 = arith.addf %10, %15 : vector<16x128xf32>
    %17 = vector.extract_strided_slice %1 {offsets = [2, 0], sizes = [1, 128], strides = [1, 1]} : vector<3x128xf32> to vector<1x128xf32>
    %18 = vector.broadcast %17 : vector<1x128xf32> to vector<16x128xf32>
    %19 = arith.addf %16, %18 : vector<16x128xf32>
    %20 = arith.truncf %19 : vector<16x128xf32> to vector<16x128xbf16>
    %c0_7 = arith.constant 0 : index
    %c0_8 = arith.constant 0 : index
    %21 = vector.load %arg5[%c0_7, %c0_8] : memref<128x16xbf16, #tpu.memory_space<vmem>>, vector<128x16xbf16>
    %cst_9 = arith.constant dense<0.000000e+00> : vector<16x16xf32>
    %22 = tpu.matmul %20, %21, %cst_9 {dimension_numbers = #tpu.dot_dimension_numbers<[1], [0], [0], [1], [0, 0, 1, 1], [], []>} : vector<16x128xbf16>, vector<128x16xbf16>, vector<16x16xf32> -> vector<16x16xf32>
    %c0_10 = arith.constant 0 : index
    %c0_11 = arith.constant 0 : index
    %23 = vector.load %arg6[%c0_10, %c0_11] : memref<1x16xf32, #tpu.memory_space<vmem>>, vector<1x16xf32>
    %24 = vector.broadcast %23 : vector<1x16xf32> to vector<16x16xf32>
    %25 = arith.addf %22, %24 : vector<16x16xf32>
    %c0_12 = arith.constant 0 : index
    %c0_13 = arith.constant 0 : index
    %26 = vector.load %arg7[%c0_12, %c0_13] : memref<16x16xf32, #tpu.memory_space<vmem>>, vector<16x16xf32>
    tpu.vector_store %arg7[%c0_12, %c0_13], %25 {strides = array<i32>} : memref<16x16xf32, #tpu.memory_space<vmem>>, vector<16x16xf32>,
    return
  }
  func.func @transform_0(%arg0: i32) -> (i32, i32) {
    %c0_i32 = arith.constant 0 : i32
    %c0_i32_0 = arith.constant 0 : i32
    return %arg0, %c0_i32 : i32, i32
  }
  func.func @transform_1(%arg0: i32) -> (i32, i32) {
    %c0_i32 = arith.constant 0 : i32
    %c0_i32_0 = arith.constant 0 : i32
    return %arg0, %c0_i32 : i32, i32
  }
  func.func @transform_2(%arg0: i32) -> (i32, i32) {
    %c0_i32 = arith.constant 0 : i32
    %c0_i32_0 = arith.constant 0 : i32
    %c0_i32_1 = arith.constant 0 : i32
    return %c0_i32, %c0_i32_0 : i32, i32
  }
  func.func @transform_3(%arg0: i32) -> (i32, i32) {
    %c0_i32 = arith.constant 0 : i32
    %c0_i32_0 = arith.constant 0 : i32
    %c0_i32_1 = arith.constant 0 : i32
    return %c0_i32, %c0_i32_0 : i32, i32
  }
  func.func @transform_4(%arg0: i32) -> (i32, i32) {
    %c0_i32 = arith.constant 0 : i32
    %c0_i32_0 = arith.constant 0 : i32
    %c0_i32_1 = arith.constant 0 : i32
    return %c0_i32, %c0_i32_0 : i32, i32
  }
  func.func @transform_5(%arg0: i32) -> (i32, i32) {
    %c0_i32 = arith.constant 0 : i32
    %c0_i32_0 = arith.constant 0 : i32
    %c0_i32_1 = arith.constant 0 : i32
    return %c0_i32, %c0_i32_0 : i32, i32
  }
  func.func @transform_6(%arg0: i32) -> (i32, i32) {
    %c0_i32 = arith.constant 0 : i32
    %c0_i32_0 = arith.constant 0 : i32
    return %arg0, %c0_i32 : i32, i32
  }
}

</mosaic_0001>

<bundles_post_ra>
// kernel: tpu_custom_call.1
= control target key start
LH: loop header
LB: loop body
LE: loop exit
PB: predicated region body
PF: predicated region fallthrough
CT: control target
= control target key end

     0   :  { %v279_v2 = vmov 0   ;;  %v280_v4 = vmov 1   ;;  %vm56_vm0 = vcmask 130048   ;;  %s367_s0 = inlined_call_operand.vmem [shape: bf16[16,16], index: 0, kind: input, shape index: {}]   ;;  %s368_s1 = inlined_call_operand.vmem [shape: f32[16,2], index: 1, kind: input, shape index: {}]   ;;  %s369_s2 = inlined_call_operand.vmem [shape: bf16[16,128], index: 2, kind: input, shape index: {}]   ;;  %s370_s3 = inlined_call_operand.vmem [shape: f32[3,128], index: 3, kind: input, shape index: {}]   ;;  %s371_s4 = inlined_call_operand.vmem [shape: bf16[128,16], index: 4, kind: input, shape index: {}]   ;;  %s372_s5 = inlined_call_operand.vmem [shape: f32[1,16], index: 5, kind: input, shape index: {}]   ;;  %s373_s6 = inlined_call_operand.hbm [shape: f32[16,16], index: 6, kind: output, shape index: {}]  }
   0x1   :  { %v235_v0 = vld [vmem:[%s369_s2] sm:$0xff]  ;;  %249 = vset.pattern.permute.xlu0 %v279_v2  ;;  %250 = vset.pattern.permute.xlu1 %v280_v4  ;;  %v243_v5 = vld [vmem:[%s371_s4 + $0x38] sm:$0xff] }
   0x2   :  { %v25_v1 = vld [vmem:[%s368_s1] sm:$0xff]  ;;  %67 = vmatpush.bf16.msra.mxu0 %v235_v0 }
   0x3   :  { %v234_v3 = vld [vmem:[%s367_s0] sm:$0xff]  ;;  %34 = vperm.xlu0 %249, %v25_v1  }
   0x4   :  { %11 = vsyncpa [#allocation3], 0  ;;  %75 = vperm.xlu1 %250, %v25_v1   ;;  %159 = vmatpush.bf16.msra.mxu1 %v243_v5  ;;  %v242_v6 = vld [vmem:[%s371_s4 + $0x30] sm:$0xff]  ;;  %v26_v7 = vld [vmem:[%s368_s1 + $0x8] sm:$0xff]  ;;  %s281_s20 = smov [#allocation2]   ;;  %s181_s24 = sshll.u32 %s373_s6, 4  ;;  %s182_s24 = int_to_ptr.hbm [resolvable:$true] %s181_s24 }
   0x5   :  { %201 = vmatmul.msk.bf16.vlgmr.msra.gmra.mxu0 %vm56_vm0, %v234_v3  ;;  %v241_v8 = vld [vmem:[%s371_s4 + $0x28] sm:$0xff]  ;;  %v240_v9 = vld [vmem:[%s371_s4 + $0x20] sm:$0xff]  ;;  %v239_v10 = vld [vmem:[%s371_s4 + $0x18] sm:$0xff]  ;;  %s179_s21 = sshll.u32 %s281_s20, 4  ;;  %s282_s25 = smov 128   ;;  %s180_s21 = int_to_ptr.vmem [resolvable:$true] %s179_s21 }
   0x6   :  { %v238_v11 = vld [vmem:[%s371_s4 + $0x10] sm:$0xff]  ;;  %v237_v12 = vld [vmem:[%s371_s4 + $0x8] sm:$0xff]  ;;  %v236_v13 = vld [vmem:[%s371_s4] sm:$0xff]  ;;  %s283_s26 = smov 8  }
   0x7   :  { %v27_v14 = vld [vmem:[%s370_s3] sm:$0x7] }
   0x8   :  { %160 = vmatpush.bf16.msra.mxu1 %v242_v6  ;;  %v42_v17 = vperm.slane %v27_v14, 0  ;;  %v82_v20 = vperm.slane %v27_v14, 1  ;;  %v87_v30 = vperm.slane %v27_v14, 2  ;;  %v252_v35 = vld [vmem:[%s372_s5] ss:$0 sm:$0xff] }
   0xb   :  { %39 = vperm.xlu0 %249, %v26_v7  }
   0xc   :  { %79 = vperm.xlu1 %250, %v26_v7   ;;  %161 = vmatpush.bf16.msra.mxu1 %v241_v8 }
  0x10   :  { %162 = vmatpush.bf16.msra.mxu1 %v240_v9 }
  0x13   :  { %251 = vset.pattern.permute.xlu0 %v280_v4 }
  0x14   :  { %163 = vmatpush.bf16.msra.mxu1 %v239_v10 }
  0x18   :  { %164 = vmatpush.bf16.msra.mxu1 %v238_v11 }
  0x1c   :  { %165 = vmatpush.bf16.msra.mxu1 %v237_v12 }
  0x20   :  { %166 = vmatpush.bf16.msra.mxu1 %v236_v13 }
  0x75   :  { %v35_v15 = vpop.permute.xlu0 %34 }
  0x76   :  { %v76_v16 = vpop.permute.xlu1 %75  ;;  %v43_v19 = vmul.f32 %v42_v17, %v35_v15 }
  0x77   :  { %v83_v22 = vmul.f32 %v82_v20, %v76_v16 }
  0x7d   :  { %v40_v21 = vpop.permute.xlu0 %39 }
  0x7e   :  { %v80_v24 = vpop.permute.xlu1 %79  ;;  %v44_v25 = vmul.f32 %v42_v17, %v40_v21 }
  0x7f   :  { %v84_v28 = vmul.f32 %v82_v20, %v80_v24 }
  0x82   :  { %v69_v18 = vpop.f32.mrf.mxu0 }
  0x83   :  { %v70_v23 = vadd.f32 %v69_v18, %v43_v19 }
  0x85   :  { %v85_v27 = vadd.f32 %v83_v22, %v70_v23 }
  0x87   :  { %v88_v32 = vadd.f32 %v87_v30, %v85_v27 }
  0x8a   :  { %v71_v26 = vpop.f32.mrf.mxu0 }
  0x8b   :  { %v72_v29 = vadd.f32 %v71_v26, %v44_v25 }
  0x8d   :  { %v86_v31 = vadd.f32 %v84_v28, %v72_v29 }
  0x8f   :  { %v89_v33 = vadd.f32 %v87_v30, %v86_v31 }
  0x91   :  { %v90_v34 = vpack.c.bf16 %v89_v33, %v88_v32 }
  0x93   :  { %167 = vmatmul.bf16.vlgmr.msra.gmra.mxu1 %v90_v34 }
 0x110   :  { %v168_v36 = vpop.f32.mrf.mxu1 }
 0x111   :  { %v169_v37 = vadd.f32 %v252_v35, %v168_v36 }
 0x113   :  { %173 = vst.msk [vmem:[#allocation2] sm:$0xff] %vm56_vm0, %v169_v37 }
 0x118   :  { %v170_v38 = vpop.f32.mrf.mxu1 }
 0x119   :  { %v171_v39 = vadd.f32 %v252_v35, %v170_v38 }
 0x11b   :  { %174 = vst.msk [vmem:[#allocation2 + $0x8] sm:$0xff] %vm56_vm0, %v171_v39 }
 0x11c   :  { %187 = dma.vmem_to_hbm [thread:$0]  %s180_s21, 256, %s182_s24, [#allocation3], %s282_s25, %s282_s25, %s283_s26  }
 0x11d   :  { %277 = dma.done.wait [#allocation3], 256  }
 0x11e   :  { %278 = vsyncadd [#allocation3], 4294967040 }
 0x11f   :  { %192 = vsyncpa [#allocation3], 1 }

</bundles_post_ra>
